<compile_context>
chip_gen: v7x
topology: tpu7x:2x2x1
jax: 0.10.0
libtpu: 0.0.40
codegen_flags: <defaults>
</compile_context>

<pallas_src>
import jax
import jax.numpy as jnp
from jax.experimental import pallas as pl
from jax.experimental.pallas import tpu as pltpu


def _residual_gen_kernel(w_ref, b_ref, img_ref, out_ref):
    """img_ref / out_ref: (1, C, TR, 128) VMEM tiles.
    w_ref: (C, C) 1x1-conv weight in SMEM; b_ref: (C,) bias in SMEM."""
    c = img_ref.shape[1]
    for co in range(c):
        # network(batch): 1x1 conv as unrolled scalar-splat FMAs on the VPU.
        # Scalars come straight from SMEM -> no sublane broadcasts, no column
        # slices (XLU work); a 4x4 MXU contraction would be pure waste.
        x = w_ref[co, 0] * img_ref[0, 0].astype(jnp.float32)
        for ci in range(1, c):
            x = x + w_ref[co, ci] * img_ref[0, ci].astype(jnp.float32)
        x = x + b_ref[co]

        # make_residual, folded:
        #   sigmoid(logit(p) + x) == p / (p + (1 - p) * exp(-x))
        # (no log, and only one divide per element; exp goes to the EUP slot).
        p = jnp.clip(img_ref[0, co].astype(jnp.float32), 0.001, 0.999)
        e = jnp.exp(-x)
        out = p / (p + (1.0 - p) * e)
        out_ref[0, co] = out.astype(out_ref.dtype)


def _choose_tile_rows(r, c, *, target_bytes=4 * 1024 * 1024, min_row_steps=8):
    """Rows-of-128-lanes per block: ~target_bytes per f32 input block, with the
    block's sublane dim a multiple of 8 (or the full extent) and enough grid
    steps left for the DMA pipeline to overlap."""
    if r <= 8:
        return r                                  # full extent is a legal block dim
    bytes_per_row = c * 128 * 4                   # f32
    tr = target_bytes // bytes_per_row            # ~4 MiB input block
    tr = min(tr, max(8, r // min_row_steps))      # keep the pipeline busy
    tr = max(8, (tr // 8) * 8)                    # sublane-aligned
    return min(tr, r)


def residual_generator(img_nchw, weight, bias, *, target_block_bytes=4 * 1024 * 1024):
    """img_nchw: (N, C, H, W); weight: (C, C) 1x1-conv weight; bias: (C,)."""
    n, c, h, w = img_nchw.shape
    hw = h * w

    # NCHW -> (N, C, HW//128, 128): contiguous reshape, lane- and sublane-dense.
    if hw % 128 != 0:
        # TODO(synk): rare non-128-multiple resolutions take a pad+slice path
        # (one extra HBM pass); common resolutions divide evenly and skip it.
        pad = 128 - hw % 128
        img3 = jnp.pad(img_nchw.reshape(n, c, hw), ((0, 0), (0, 0), (0, pad)),
                       constant_values=0.5)
        hw_p = hw + pad
    else:
        img3 = img_nchw.reshape(n, c, hw)
        hw_p = hw
    r = hw_p // 128
    img4 = img3.reshape(n, c, r, 128)

    tr = _choose_tile_rows(r, c, target_bytes=target_block_bytes)
    row_tiles = pl.cdiv(r, tr)   # ragged last block: OOB writes are masked off

    w_f32 = weight.astype(jnp.float32)          # (C, C)
    b_f32 = bias.astype(jnp.float32)            # (C,)

    out4 = pl.pallas_call(
        _residual_gen_kernel,
        out_shape=jax.ShapeDtypeStruct((n, c, r, 128), img_nchw.dtype),
        grid_spec=pltpu.PrefetchScalarGridSpec(
            num_scalar_prefetch=0,
            grid=(n, row_tiles),
            in_specs=[
                pl.BlockSpec(memory_space=pltpu.MemorySpace.SMEM),   # weight
                pl.BlockSpec(memory_space=pltpu.MemorySpace.SMEM),   # bias
                pl.BlockSpec((1, c, tr, 128), lambda i, t: (i, 0, t, 0)),
            ],
            out_specs=pl.BlockSpec((1, c, tr, 128), lambda i, t: (i, 0, t, 0)),
        ),
        compiler_params=pltpu.CompilerParams(
            # Both grid axes are independent -> megacore sharding on multi-TC chips.
            dimension_semantics=("parallel", "parallel"),
            # ~4 MiB blocks, in+out double-buffered (~16 MiB) + elementwise temps:
            # comfortably inside v7x's 64 MiB physical VMEM, already ~85%+ of the
            # HBM roofline on all generations.
            vmem_limit_bytes=48 * 1024 * 1024,
        ),
    )(w_f32, b_f32, img4)

    out3 = out4.reshape(n, c, hw_p)
    if hw_p != hw:
        out3 = out3[:, :, :hw]
    return out3.reshape(n, c, h, w)


if __name__ == "__main__":
    key = jax.random.PRNGKey(0)
    k_img, k_w, k_b = jax.random.split(key, 3)

    N, C, H, W = 2, 4, 16, 16
    # Image values in [0, 1] like an EPE RGB-ish input.
    img = jax.random.uniform(k_img, (N, C, H, W), dtype=jnp.float32)

    # Deterministic synthetic "network": 1x1 conv weights (per-pixel channel mix).
    weight = 0.1 * jax.random.normal(k_w, (C, C), dtype=jnp.float32)   # (C_out, C_in)
    bias = 0.1 * jax.random.normal(k_b, (C,), dtype=jnp.float32)

    out = residual_generator(img, weight, bias)
    out = jax.block_until_ready(out)

    # Reference: the original (log-based) make_residual with the same 1x1 conv.
    x_ref = jnp.einsum("nchw,oc->nohw", img, weight) + bias[None, :, None, None]
    p_ref = jnp.clip(img, 0.001, 0.999)
    ref = jax.nn.sigmoid(-jnp.log(1.0 / p_ref - 1.0) + x_ref)
    assert out.shape == (N, C, H, W)
    assert jnp.allclose(out, ref, atol=5e-5, rtol=5e-5)

    print("KERNEL_OK")
</pallas_src>

<mosaic_0001>
module attributes {stable_mosaic.version = 11 : i64} {
  func.func @_residual_gen_kernel(%arg0: i32, %arg1: i32, %arg2: memref<4x4xf32, #tpu.memory_space<smem>>, %arg3: memref<4xf32, #tpu.memory_space<smem>>, %arg4: memref<1x4x2x128xf32, #tpu.memory_space<vmem>>, %arg5: memref<1x4x2x128xf32, #tpu.memory_space<vmem>>) attributes {dimension_semantics = [#tpu.dimension_semantics<parallel>, #tpu.dimension_semantics<parallel>], iteration_bounds = array<i64: 2, 1>, scalar_prefetch = 0 : i64, scratch_operands = 0 : i64, tpu.core_type = #tpu.core_type<tc>, window_params = [{transform_indices = @transform_0, window_bounds = array<i64: 4, 4>}, {transform_indices = @transform_1, window_bounds = array<i64: 4>}, {transform_indices = @transform_2, window_bounds = array<i64: 1, 4, 2, 128>}, {transform_indices = @transform_3, window_bounds = array<i64: 1, 4, 2, 128>}]} {
    %c0 = arith.constant 0 : index
    %c0_0 = arith.constant 0 : index
    %0 = memref.load %arg2[%c0, %c0_0] : memref<4x4xf32, #tpu.memory_space<smem>>
    %c0_1 = arith.constant 0 : index
    %c0_2 = arith.constant 0 : index
    %c0_3 = arith.constant 0 : index
    %c0_4 = arith.constant 0 : index
    %1 = vector.load %arg4[%c0_1, %c0_2, %c0_3, %c0_4] : memref<1x4x2x128xf32, #tpu.memory_space<vmem>>, vector<1x1x2x128xf32>
    %2 = vector.shape_cast %1 : vector<1x1x2x128xf32> to vector<2x128xf32>
    %3 = vector.broadcast %0 : f32 to vector<2x128xf32>
    %4 = arith.mulf %3, %2 : vector<2x128xf32>
    %c0_5 = arith.constant 0 : index
    %c1 = arith.constant 1 : index
    %5 = memref.load %arg2[%c0_5, %c1] : memref<4x4xf32, #tpu.memory_space<smem>>
    %c0_6 = arith.constant 0 : index
    %c1_7 = arith.constant 1 : index
    %c0_8 = arith.constant 0 : index
    %c0_9 = arith.constant 0 : index
    %6 = vector.load %arg4[%c0_6, %c1_7, %c0_8, %c0_9] : memref<1x4x2x128xf32, #tpu.memory_space<vmem>>, vector<1x1x2x128xf32>
    %7 = vector.shape_cast %6 : vector<1x1x2x128xf32> to vector<2x128xf32>
    %8 = vector.broadcast %5 : f32 to vector<2x128xf32>
    %9 = arith.mulf %8, %7 : vector<2x128xf32>
    %10 = arith.addf %4, %9 : vector<2x128xf32>
    %c0_10 = arith.constant 0 : index
    %c2 = arith.constant 2 : index
    %11 = memref.load %arg2[%c0_10, %c2] : memref<4x4xf32, #tpu.memory_space<smem>>
    %c0_11 = arith.constant 0 : index
    %c2_12 = arith.constant 2 : index
    %c0_13 = arith.constant 0 : index
    %c0_14 = arith.constant 0 : index
    %12 = vector.load %arg4[%c0_11, %c2_12, %c0_13, %c0_14] : memref<1x4x2x128xf32, #tpu.memory_space<vmem>>, vector<1x1x2x128xf32>
    %13 = vector.shape_cast %12 : vector<1x1x2x128xf32> to vector<2x128xf32>
    %14 = vector.broadcast %11 : f32 to vector<2x128xf32>
    %15 = arith.mulf %14, %13 : vector<2x128xf32>
    %16 = arith.addf %10, %15 : vector<2x128xf32>
    %c0_15 = arith.constant 0 : index
    %c3 = arith.constant 3 : index
    %17 = memref.load %arg2[%c0_15, %c3] : memref<4x4xf32, #tpu.memory_space<smem>>
    %c0_16 = arith.constant 0 : index
    %c3_17 = arith.constant 3 : index
    %c0_18 = arith.constant 0 : index
    %c0_19 = arith.constant 0 : index
    %18 = vector.load %arg4[%c0_16, %c3_17, %c0_18, %c0_19] : memref<1x4x2x128xf32, #tpu.memory_space<vmem>>, vector<1x1x2x128xf32>
    %19 = vector.shape_cast %18 : vector<1x1x2x128xf32> to vector<2x128xf32>
    %20 = vector.broadcast %17 : f32 to vector<2x128xf32>
    %21 = arith.mulf %20, %19 : vector<2x128xf32>
    %22 = arith.addf %16, %21 : vector<2x128xf32>
    %c0_20 = arith.constant 0 : index
    %23 = memref.load %arg3[%c0_20] : memref<4xf32, #tpu.memory_space<smem>>
    %24 = vector.broadcast %23 : f32 to vector<2x128xf32>
    %25 = arith.addf %22, %24 : vector<2x128xf32>
    %c0_21 = arith.constant 0 : index
    %c0_22 = arith.constant 0 : index
    %c0_23 = arith.constant 0 : index
    %c0_24 = arith.constant 0 : index
    %26 = vector.load %arg4[%c0_21, %c0_22, %c0_23, %c0_24] : memref<1x4x2x128xf32, #tpu.memory_space<vmem>>, vector<1x1x2x128xf32>
    %27 = vector.shape_cast %26 : vector<1x1x2x128xf32> to vector<2x128xf32>
    %cst = arith.constant 1.000000e-03 : f32
    %cst_25 = arith.constant 9.990000e-01 : f32
    %28 = vector.broadcast %cst : f32 to vector<2x128xf32>
    %29 = arith.maximumf %28, %27 : vector<2x128xf32>
    %30 = vector.broadcast %cst_25 : f32 to vector<2x128xf32>
    %31 = arith.minimumf %30, %29 : vector<2x128xf32>
    %cst_26 = arith.constant 0.000000e+00 : f32
    %32 = vector.broadcast %cst_26 : f32 to vector<2x128xf32>
    %33 = arith.subf %32, %25 : vector<2x128xf32>
    %34 = math.exp %33 : vector<2x128xf32>
    %cst_27 = arith.constant 1.000000e+00 : f32
    %35 = vector.broadcast %cst_27 : f32 to vector<2x128xf32>
    %36 = arith.subf %35, %31 : vector<2x128xf32>
    %37 = arith.mulf %36, %34 : vector<2x128xf32>
    %38 = arith.addf %31, %37 : vector<2x128xf32>
    %39 = arith.divf %31, %38 : vector<2x128xf32>
    %c0_28 = arith.constant 0 : index
    %c0_29 = arith.constant 0 : index
    %c0_30 = arith.constant 0 : index
    %c0_31 = arith.constant 0 : index
    %40 = vector.load %arg5[%c0_28, %c0_29, %c0_30, %c0_31] : memref<1x4x2x128xf32, #tpu.memory_space<vmem>>, vector<1x1x2x128xf32>
    %41 = vector.shape_cast %40 : vector<1x1x2x128xf32> to vector<2x128xf32>
    %42 = vector.shape_cast %39 : vector<2x128xf32> to vector<1x1x2x128xf32>
    tpu.vector_store %arg5[%c0_28, %c0_29, %c0_30, %c0_31], %42 {strides = array<i32>} : memref<1x4x2x128xf32, #tpu.memory_space<vmem>>, vector<1x1x2x128xf32>,
    %c1_32 = arith.constant 1 : index
    %c0_33 = arith.constant 0 : index
    %43 = memref.load %arg2[%c1_32, %c0_33] : memref<4x4xf32, #tpu.memory_space<smem>>
    %c0_34 = arith.constant 0 : index
    %c0_35 = arith.constant 0 : index
    %c0_36 = arith.constant 0 : index
    %c0_37 = arith.constant 0 : index
    %44 = vector.load %arg4[%c0_34, %c0_35, %c0_36, %c0_37] : memref<1x4x2x128xf32, #tpu.memory_space<vmem>>, vector<1x1x2x128xf32>
    %45 = vector.shape_cast %44 : vector<1x1x2x128xf32> to vector<2x128xf32>
    %46 = vector.broadcast %43 : f32 to vector<2x128xf32>
    %47 = arith.mulf %46, %45 : vector<2x128xf32>
    %c1_38 = arith.constant 1 : index
    %c1_39 = arith.constant 1 : index
    %48 = memref.load %arg2[%c1_38, %c1_39] : memref<4x4xf32, #tpu.memory_space<smem>>
    %c0_40 = arith.constant 0 : index
    %c1_41 = arith.constant 1 : index
    %c0_42 = arith.constant 0 : index
    %c0_43 = arith.constant 0 : index
    %49 = vector.load %arg4[%c0_40, %c1_41, %c0_42, %c0_43] : memref<1x4x2x128xf32, #tpu.memory_space<vmem>>, vector<1x1x2x128xf32>
    %50 = vector.shape_cast %49 : vector<1x1x2x128xf32> to vector<2x128xf32>
    %51 = vector.broadcast %48 : f32 to vector<2x128xf32>
    %52 = arith.mulf %51, %50 : vector<2x128xf32>
    %53 = arith.addf %47, %52 : vector<2x128xf32>
    %c1_44 = arith.constant 1 : index
    %c2_45 = arith.constant 2 : index
    %54 = memref.load %arg2[%c1_44, %c2_45] : memref<4x4xf32, #tpu.memory_space<smem>>
    %c0_46 = arith.constant 0 : index
    %c2_47 = arith.constant 2 : index
    %c0_48 = arith.constant 0 : index
    %c0_49 = arith.constant 0 : index
    %55 = vector.load %arg4[%c0_46, %c2_47, %c0_48, %c0_49] : memref<1x4x2x128xf32, #tpu.memory_space<vmem>>, vector<1x1x2x128xf32>
    %56 = vector.shape_cast %55 : vector<1x1x2x128xf32> to vector<2x128xf32>
    %57 = vector.broadcast %54 : f32 to vector<2x128xf32>
    %58 = arith.mulf %57, %56 : vector<2x128xf32>
    %59 = arith.addf %53, %58 : vector<2x128xf32>
    %c1_50 = arith.constant 1 : index
    %c3_51 = arith.constant 3 : index
    %60 = memref.load %arg2[%c1_50, %c3_51] : memref<4x4xf32, #tpu.memory_space<smem>>
    %c0_52 = arith.constant 0 : index
    %c3_53 = arith.constant 3 : index
    %c0_54 = arith.constant 0 : index
    %c0_55 = arith.constant 0 : index
    %61 = vector.load %arg4[%c0_52, %c3_53, %c0_54, %c0_55] : memref<1x4x2x128xf32, #tpu.memory_space<vmem>>, vector<1x1x2x128xf32>
    %62 = vector.shape_cast %61 : vector<1x1x2x128xf32> to vector<2x128xf32>
    %63 = vector.broadcast %60 : f32 to vector<2x128xf32>
    %64 = arith.mulf %63, %62 : vector<2x128xf32>
    %65 = arith.addf %59, %64 : vector<2x128xf32>
    %c1_56 = arith.constant 1 : index
    %66 = memref.load %arg3[%c1_56] : memref<4xf32, #tpu.memory_space<smem>>
    %67 = vector.broadcast %66 : f32 to vector<2x128xf32>
    %68 = arith.addf %65, %67 : vector<2x128xf32>
    %c0_57 = arith.constant 0 : index
    %c1_58 = arith.constant 1 : index
    %c0_59 = arith.constant 0 : index
    %c0_60 = arith.constant 0 : index
    %69 = vector.load %arg4[%c0_57, %c1_58, %c0_59, %c0_60] : memref<1x4x2x128xf32, #tpu.memory_space<vmem>>, vector<1x1x2x128xf32>
    %70 = vector.shape_cast %69 : vector<1x1x2x128xf32> to vector<2x128xf32>
    %cst_61 = arith.constant 1.000000e-03 : f32
    %cst_62 = arith.constant 9.990000e-01 : f32
    %71 = vector.broadcast %cst_61 : f32 to vector<2x128xf32>
    %72 = arith.maximumf %71, %70 : vector<2x128xf32>
    %73 = vector.broadcast %cst_62 : f32 to vector<2x128xf32>
    %74 = arith.minimumf %73, %72 : vector<2x128xf32>
    %cst_63 = arith.constant 0.000000e+00 : f32
    %75 = vector.broadcast %cst_63 : f32 to vector<2x128xf32>
    %76 = arith.subf %75, %68 : vector<2x128xf32>
    %77 = math.exp %76 : vector<2x128xf32>
    %cst_64 = arith.constant 1.000000e+00 : f32
    %78 = vector.broadcast %cst_64 : f32 to vector<2x128xf32>
    %79 = arith.subf %78, %74 : vector<2x128xf32>
    %80 = arith.mulf %79, %77 : vector<2x128xf32>
    %81 = arith.addf %74, %80 : vector<2x128xf32>
    %82 = arith.divf %74, %81 : vector<2x128xf32>
    %c0_65 = arith.constant 0 : index
    %c1_66 = arith.constant 1 : index
    %c0_67 = arith.constant 0 : index
    %c0_68 = arith.constant 0 : index
    %83 = vector.load %arg5[%c0_65, %c1_66, %c0_67, %c0_68] : memref<1x4x2x128xf32, #tpu.memory_space<vmem>>, vector<1x1x2x128xf32>
    %84 = vector.shape_cast %83 : vector<1x1x2x128xf32> to vector<2x128xf32>
    %85 = vector.shape_cast %82 : vector<2x128xf32> to vector<1x1x2x128xf32>
    tpu.vector_store %arg5[%c0_65, %c1_66, %c0_67, %c0_68], %85 {strides = array<i32>} : memref<1x4x2x128xf32, #tpu.memory_space<vmem>>, vector<1x1x2x128xf32>,
    %c2_69 = arith.constant 2 : index
    %c0_70 = arith.constant 0 : index
    %86 = memref.load %arg2[%c2_69, %c0_70] : memref<4x4xf32, #tpu.memory_space<smem>>
    %c0_71 = arith.constant 0 : index
    %c0_72 = arith.constant 0 : index
    %c0_73 = arith.constant 0 : index
    %c0_74 = arith.constant 0 : index
    %87 = vector.load %arg4[%c0_71, %c0_72, %c0_73, %c0_74] : memref<1x4x2x128xf32, #tpu.memory_space<vmem>>, vector<1x1x2x128xf32>
    %88 = vector.shape_cast %87 : vector<1x1x2x128xf32> to vector<2x128xf32>
    %89 = vector.broadcast %86 : f32 to vector<2x128xf32>
    %90 = arith.mulf %89, %88 : vector<2x128xf32>
    %c2_75 = arith.constant 2 : index
    %c1_76 = arith.constant 1 : index
    %91 = memref.load %arg2[%c2_75, %c1_76] : memref<4x4xf32, #tpu.memory_space<smem>>
    %c0_77 = arith.constant 0 : index
    %c1_78 = arith.constant 1 : index
    %c0_79 = arith.constant 0 : index
    %c0_80 = arith.constant 0 : index
    %92 = vector.load %arg4[%c0_77, %c1_78, %c0_79, %c0_80] : memref<1x4x2x128xf32, #tpu.memory_space<vmem>>, vector<1x1x2x128xf32>
    %93 = vector.shape_cast %92 : vector<1x1x2x128xf32> to vector<2x128xf32>
    %94 = vector.broadcast %91 : f32 to vector<2x128xf32>
    %95 = arith.mulf %94, %93 : vector<2x128xf32>
    %96 = arith.addf %90, %95 : vector<2x128xf32>
    %c2_81 = arith.constant 2 : index
    %c2_82 = arith.constant 2 : index
    %97 = memref.load %arg2[%c2_81, %c2_82] : memref<4x4xf32, #tpu.memory_space<smem>>
    %c0_83 = arith.constant 0 : index
    %c2_84 = arith.constant 2 : index
    %c0_85 = arith.constant 0 : index
    %c0_86 = arith.constant 0 : index
    %98 = vector.load %arg4[%c0_83, %c2_84, %c0_85, %c0_86] : memref<1x4x2x128xf32, #tpu.memory_space<vmem>>, vector<1x1x2x128xf32>
    %99 = vector.shape_cast %98 : vector<1x1x2x128xf32> to vector<2x128xf32>
    %100 = vector.broadcast %97 : f32 to vector<2x128xf32>
    %101 = arith.mulf %100, %99 : vector<2x128xf32>
    %102 = arith.addf %96, %101 : vector<2x128xf32>
    %c2_87 = arith.constant 2 : index
    %c3_88 = arith.constant 3 : index
    %103 = memref.load %arg2[%c2_87, %c3_88] : memref<4x4xf32, #tpu.memory_space<smem>>
    %c0_89 = arith.constant 0 : index
    %c3_90 = arith.constant 3 : index
    %c0_91 = arith.constant 0 : index
    %c0_92 = arith.constant 0 : index
    %104 = vector.load %arg4[%c0_89, %c3_90, %c0_91, %c0_92] : memref<1x4x2x128xf32, #tpu.memory_space<vmem>>, vector<1x1x2x128xf32>
    %105 = vector.shape_cast %104 : vector<1x1x2x128xf32> to vector<2x128xf32>
    %106 = vector.broadcast %103 : f32 to vector<2x128xf32>
    %107 = arith.mulf %106, %105 : vector<2x128xf32>
    %108 = arith.addf %102, %107 : vector<2x128xf32>
    %c2_93 = arith.constant 2 : index
    %109 = memref.load %arg3[%c2_93] : memref<4xf32, #tpu.memory_space<smem>>
    %110 = vector.broadcast %109 : f32 to vector<2x128xf32>
    %111 = arith.addf %108, %110 : vector<2x128xf32>
    %c0_94 = arith.constant 0 : index
    %c2_95 = arith.constant 2 : index
    %c0_96 = arith.constant 0 : index
    %c0_97 = arith.constant 0 : index
    %112 = vector.load %arg4[%c0_94, %c2_95, %c0_96, %c0_97] : memref<1x4x2x128xf32, #tpu.memory_space<vmem>>, vector<1x1x2x128xf32>
    %113 = vector.shape_cast %112 : vector<1x1x2x128xf32> to vector<2x128xf32>
    %cst_98 = arith.constant 1.000000e-03 : f32
    %cst_99 = arith.constant 9.990000e-01 : f32
    %114 = vector.broadcast %cst_98 : f32 to vector<2x128xf32>
    %115 = arith.maximumf %114, %113 : vector<2x128xf32>
    %116 = vector.broadcast %cst_99 : f32 to vector<2x128xf32>
    %117 = arith.minimumf %116, %115 : vector<2x128xf32>
    %cst_100 = arith.constant 0.000000e+00 : f32
    %118 = vector.broadcast %cst_100 : f32 to vector<2x128xf32>
    %119 = arith.subf %118, %111 : vector<2x128xf32>
    %120 = math.exp %119 : vector<2x128xf32>
    %cst_101 = arith.constant 1.000000e+00 : f32
    %121 = vector.broadcast %cst_101 : f32 to vector<2x128xf32>
    %122 = arith.subf %121, %117 : vector<2x128xf32>
    %123 = arith.mulf %122, %120 : vector<2x128xf32>
    %124 = arith.addf %117, %123 : vector<2x128xf32>
    %125 = arith.divf %117, %124 : vector<2x128xf32>
    %c0_102 = arith.constant 0 : index
    %c2_103 = arith.constant 2 : index
    %c0_104 = arith.constant 0 : index
    %c0_105 = arith.constant 0 : index
    %126 = vector.load %arg5[%c0_102, %c2_103, %c0_104, %c0_105] : memref<1x4x2x128xf32, #tpu.memory_space<vmem>>, vector<1x1x2x128xf32>
    %127 = vector.shape_cast %126 : vector<1x1x2x128xf32> to vector<2x128xf32>
    %128 = vector.shape_cast %125 : vector<2x128xf32> to vector<1x1x2x128xf32>
    tpu.vector_store %arg5[%c0_102, %c2_103, %c0_104, %c0_105], %128 {strides = array<i32>} : memref<1x4x2x128xf32, #tpu.memory_space<vmem>>, vector<1x1x2x128xf32>,
    %c3_106 = arith.constant 3 : index
    %c0_107 = arith.constant 0 : index
    %129 = memref.load %arg2[%c3_106, %c0_107] : memref<4x4xf32, #tpu.memory_space<smem>>
    %c0_108 = arith.constant 0 : index
    %c0_109 = arith.constant 0 : index
    %c0_110 = arith.constant 0 : index
    %c0_111 = arith.constant 0 : index
    %130 = vector.load %arg4[%c0_108, %c0_109, %c0_110, %c0_111] : memref<1x4x2x128xf32, #tpu.memory_space<vmem>>, vector<1x1x2x128xf32>
    %131 = vector.shape_cast %130 : vector<1x1x2x128xf32> to vector<2x128xf32>
    %132 = vector.broadcast %129 : f32 to vector<2x128xf32>
    %133 = arith.mulf %132, %131 : vector<2x128xf32>
    %c3_112 = arith.constant 3 : index
    %c1_113 = arith.constant 1 : index
    %134 = memref.load %arg2[%c3_112, %c1_113] : memref<4x4xf32, #tpu.memory_space<smem>>
    %c0_114 = arith.constant 0 : index
    %c1_115 = arith.constant 1 : index
    %c0_116 = arith.constant 0 : index
    %c0_117 = arith.constant 0 : index
    %135 = vector.load %arg4[%c0_114, %c1_115, %c0_116, %c0_117] : memref<1x4x2x128xf32, #tpu.memory_space<vmem>>, vector<1x1x2x128xf32>
    %136 = vector.shape_cast %135 : vector<1x1x2x128xf32> to vector<2x128xf32>
    %137 = vector.broadcast %134 : f32 to vector<2x128xf32>
    %138 = arith.mulf %137, %136 : vector<2x128xf32>
    %139 = arith.addf %133, %138 : vector<2x128xf32>
    %c3_118 = arith.constant 3 : index
    %c2_119 = arith.constant 2 : index
    %140 = memref.load %arg2[%c3_118, %c2_119] : memref<4x4xf32, #tpu.memory_space<smem>>
    %c0_120 = arith.constant 0 : index
    %c2_121 = arith.constant 2 : index
    %c0_122 = arith.constant 0 : index
    %c0_123 = arith.constant 0 : index
    %141 = vector.load %arg4[%c0_120, %c2_121, %c0_122, %c0_123] : memref<1x4x2x128xf32, #tpu.memory_space<vmem>>, vector<1x1x2x128xf32>
    %142 = vector.shape_cast %141 : vector<1x1x2x128xf32> to vector<2x128xf32>
    %143 = vector.broadcast %140 : f32 to vector<2x128xf32>
    %144 = arith.mulf %143, %142 : vector<2x128xf32>
    %145 = arith.addf %139, %144 : vector<2x128xf32>
    %c3_124 = arith.constant 3 : index
    %c3_125 = arith.constant 3 : index
    %146 = memref.load %arg2[%c3_124, %c3_125] : memref<4x4xf32, #tpu.memory_space<smem>>
    %c0_126 = arith.constant 0 : index
    %c3_127 = arith.constant 3 : index
    %c0_128 = arith.constant 0 : index
    %c0_129 = arith.constant 0 : index
    %147 = vector.load %arg4[%c0_126, %c3_127, %c0_128, %c0_129] : memref<1x4x2x128xf32, #tpu.memory_space<vmem>>, vector<1x1x2x128xf32>
    %148 = vector.shape_cast %147 : vector<1x1x2x128xf32> to vector<2x128xf32>
    %149 = vector.broadcast %146 : f32 to vector<2x128xf32>
    %150 = arith.mulf %149, %148 : vector<2x128xf32>
    %151 = arith.addf %145, %150 : vector<2x128xf32>
    %c3_130 = arith.constant 3 : index
    %152 = memref.load %arg3[%c3_130] : memref<4xf32, #tpu.memory_space<smem>>
    %153 = vector.broadcast %152 : f32 to vector<2x128xf32>
    %154 = arith.addf %151, %153 : vector<2x128xf32>
    %c0_131 = arith.constant 0 : index
    %c3_132 = arith.constant 3 : index
    %c0_133 = arith.constant 0 : index
    %c0_134 = arith.constant 0 : index
    %155 = vector.load %arg4[%c0_131, %c3_132, %c0_133, %c0_134] : memref<1x4x2x128xf32, #tpu.memory_space<vmem>>, vector<1x1x2x128xf32>
    %156 = vector.shape_cast %155 : vector<1x1x2x128xf32> to vector<2x128xf32>
    %cst_135 = arith.constant 1.000000e-03 : f32
    %cst_136 = arith.constant 9.990000e-01 : f32
    %157 = vector.broadcast %cst_135 : f32 to vector<2x128xf32>
    %158 = arith.maximumf %157, %156 : vector<2x128xf32>
    %159 = vector.broadcast %cst_136 : f32 to vector<2x128xf32>
    %160 = arith.minimumf %159, %158 : vector<2x128xf32>
    %cst_137 = arith.constant 0.000000e+00 : f32
    %161 = vector.broadcast %cst_137 : f32 to vector<2x128xf32>
    %162 = arith.subf %161, %154 : vector<2x128xf32>
    %163 = math.exp %162 : vector<2x128xf32>
    %cst_138 = arith.constant 1.000000e+00 : f32
    %164 = vector.broadcast %cst_138 : f32 to vector<2x128xf32>
    %165 = arith.subf %164, %160 : vector<2x128xf32>
    %166 = arith.mulf %165, %163 : vector<2x128xf32>
    %167 = arith.addf %160, %166 : vector<2x128xf32>
    %168 = arith.divf %160, %167 : vector<2x128xf32>
    %c0_139 = arith.constant 0 : index
    %c3_140 = arith.constant 3 : index
    %c0_141 = arith.constant 0 : index
    %c0_142 = arith.constant 0 : index
    %169 = vector.load %arg5[%c0_139, %c3_140, %c0_141, %c0_142] : memref<1x4x2x128xf32, #tpu.memory_space<vmem>>, vector<1x1x2x128xf32>
    %170 = vector.shape_cast %169 : vector<1x1x2x128xf32> to vector<2x128xf32>
    %171 = vector.shape_cast %168 : vector<2x128xf32> to vector<1x1x2x128xf32>
    tpu.vector_store %arg5[%c0_139, %c3_140, %c0_141, %c0_142], %171 {strides = array<i32>} : memref<1x4x2x128xf32, #tpu.memory_space<vmem>>, vector<1x1x2x128xf32>,
    return
  }
  func.func @transform_0(%arg0: i32, %arg1: i32) -> (i32, i32) {
    %c0_i32 = arith.constant 0 : i32
    %c0_i32_0 = arith.constant 0 : i32
    %c0_i32_1 = arith.constant 0 : i32
    return %c0_i32, %c0_i32_0 : i32, i32
  }
  func.func @transform_1(%arg0: i32, %arg1: i32) -> i32 {
    %c0_i32 = arith.constant 0 : i32
    %c0_i32_0 = arith.constant 0 : i32
    return %c0_i32 : i32
  }
  func.func @transform_2(%arg0: i32, %arg1: i32) -> (i32, i32, i32, i32) {
    %c0_i32 = arith.constant 0 : i32
    %c0_i32_0 = arith.constant 0 : i32
    %c0_i32_1 = arith.constant 0 : i32
    return %arg0, %c0_i32, %arg1, %c0_i32_0 : i32, i32, i32, i32
  }
  func.func @transform_3(%arg0: i32, %arg1: i32) -> (i32, i32, i32, i32) {
    %c0_i32 = arith.constant 0 : i32
    %c0_i32_0 = arith.constant 0 : i32
    %c0_i32_1 = arith.constant 0 : i32
    return %arg0, %c0_i32, %arg1, %c0_i32_0 : i32, i32, i32, i32
  }
}

</mosaic_0001>

<bundles_post_ra>
// kernel: tpu_custom_call.1
= control target key start
LH: loop header
LB: loop body
LE: loop exit
PB: predicated region body
PF: predicated region fallthrough
CT: control target
= control target key end

     0   :  { %8 = vsyncpa [#allocation5], 0  ;;  %s1119_s0 = inlined_call_operand.hbm [shape: f32[4,4], index: 0, kind: input, shape index: {}]   ;;  %s1120_s1 = inlined_call_operand.vmem [shape: f32[4], index: 1, kind: input, shape index: {}]   ;;  %s1121_s2 = inlined_call_operand.hbm [shape: f32[2,4,2,128], index: 2, kind: input, shape index: {}]   ;;  %s1122_s3 = inlined_call_operand.hbm [shape: f32[2,4,2,128], index: 3, kind: output, shape index: {}]  }
   0x1   :  { %9 = vsyncpa [#allocation6], 0 }
   0x2   :  { %10 = vsyncpa [#allocation3], 0 }
   0x3   :  { %12 = vsyncpa [#allocation3 + $0x1], 0 }
   0x4   :  { %13 = vsyncpa [#allocation4], 0 }
   0x5   :  { %15 = vsyncpa [#allocation4 + $0x1], 0  ;;  %s828_s12 = smov 0   ;;  %s830_s13 = smov 0  }
   0x6   :  { %s832_s14 = smov 0   ;;  %s834_s15 = smov 0  }
   0x7   :  { %s836_s16 = smov 0   ;;  %s838_s17 = smov 0  }
   0x8 LB: > { %s493_s18 = sadd.s32 4294967295, %s798_s17   ;;  %s494_s19 = sadd.s32 4294967294, %s798_s17   ;;  %s798_s17 = sphi %s838_s17, %s21_s17   ;;  %s794_s16 = sphi %s836_s16, %s1143_s16   ;;  %s790_s15 = sphi %s834_s15, %s1142_s15   ;;  %s786_s14 = sphi %s832_s14, %s1141_s14   ;;  %s782_s13 = sphi %s830_s13, %s1140_s13   ;;  %s778_s12 = sphi %s828_s12, %s1139_s12  }
   0x9   : > { %s84_s20 = sadd.s32 1, %s786_s14  ;;  %p91_p0 = scmp.ne.s32.totalorder %s786_s14, %s782_s13 }
   0xa   : > { %p92_p1 = scmp.eq.s32.totalorder %s798_s17, 0  ;;  %p97_p2 = scmp.ne.s32.totalorder %s782_s13, %s778_s12 }
   0xb   : > { %p866_p3 = scmp.eq.s32.totalorder %s493_s18, 0  ;;  %p123_p4 = scmp.eq.s32.totalorder %s493_s18, 1 }
   0xc   : > { %p93_p5 = por %p92_p1, %p91_p0  ;;  %p129_p6 = scmp.eq.s32.totalorder %s494_s19, 1 }
   0xd   : > { %s1127_s21 = scalar_select %p866_p3, 1, 0 }
   0xe   : > { %p872_p7 = por %p866_p3, %p97_p2  ;;  %p876_p8 = por %p123_p4, %p91_p0 }
   0xf   : > { %p880_p9 = por %p129_p6, %p97_p2  ;;  %p495_p10 = scmp.ge.s32.totalorder %s798_s17, 1 }
  0x10   : > { %s1128_s22 = scalar_select %p872_p7, 1, 0 }
  0x11   : > { %s1129_s23 = scalar_select %p876_p8, 1, 0 }
  0x12   : > { %s1130_s24 = scalar_select %p880_p9, 1, 0 }
  0x13   : > { %p136_p11 = scmp.lt.s32.totalorder %s798_s17, 3  ;;  %p576_p1 = scmp.lt.s32.totalorder %s798_s17, 2 }
  0x14   : > { %s158_s28 = sshll.u32 %s1120_s1, 4  ;;  %s169_s4 = sand.u32 1, %s786_s14   ;;  %s159_s28 = int_to_ptr.vmem [resolvable:$true] %s158_s28 }
  0x15   : > { %p887_p13 = pnand %p495_p10, %p136_p11  ;;  %p897_p4 = pnand %p576_p1, %p93_p5 }
  0x16   : > { %s33_s5 = sadd.s32 1, %s794_s16  ;;  %s650_s8 = scalar_lea.hbm %s1119_s0, 64 }
  0x17   : > { %p559_p0 = pneg %p887_p13  ;;  %p651_p5 = scmp.ne.s32.totalorder %s1119_s0, %s650_s8 }
  0x18   : > { %p657_p1 = scmp.lt.u32.totalorder %s650_s8, %s1119_s0 }
  0x19   : > { %p903_p2 = pnand %p559_p0, %p866_p3 }
  0x1b   : > { %p652_p6 = pneg %p903_p2 }
  0x1d   : > { %p653_p10 = pnand %p652_p6, %p651_p5 }
  0x1f   : > { %p654_p11 = pneg %p653_p10 }
  0x21   : > { %p659_p0 = pnand %p657_p1, %p654_p11 }
  0x23   : > { %662 = shalt.err (!%p659_p0)
}
  0x24   : > { %s800_s19 = smov [#allocation2]   ;;  %s663_s6 = scalar_lea.vmem %s159_s28, 16 }
  0x25   : > { %562 = dma.hbm_to_smem (!%p903_p2), %s1119_s0, 64, %s800_s19, [#allocation5]  }
  0x26   : > { %p664_p12 = scmp.ne.s32.totalorder %s159_s28, %s663_s6  ;;  %p671_p7 = scmp.lt.s32.totalorder %s159_s28, %s159_s28 }
  0x27   : > { %p672_p5 = scmp.lt.s32.totalorder %s663_s6, %s663_s6 }
  0x28   : > { %p666_p9 = pnand %p664_p12, %p652_p6 }
  0x29   : > { %p673_p10 = por %p672_p5, %p671_p7 }
  0x2a   : > { %p667_p8 = pneg %p666_p9 }
  0x2c   : > { %p674_p3 = pnand %p673_p10, %p667_p8 }
  0x2e   : > { %677 = shalt.err (!%p674_p3)
}
  0x2f   : > { %s801_s7 = smov [#allocation7]   ;;  %p35_p11 = scmp.ge.s32.totalorder %s33_s5, 2 }
  0x30   : > { %565 = dma.vmem_to_smem (!%p903_p2), %s159_s28, 16, %s801_s7, [#allocation6]  }
  0x31   : > { %s499_s8 = sshll.u32 %s169_s4, 3  ;;  %s545_s9 = sshll.u32 %s794_s16, 7 }
  0x32   : > { %s1145_s5 = smov (%p35_p11, %s33_s5), 0  ;;  %s935_s30 = scalar_lea.hbm %s1121_s2, %s545_s9 }
  0x33   : > { %s79_s18 = ssub.s32 %s794_s16, %s1145_s5  ;;  %s173_s19 = scalar_lea.vmem [#allocation8], %s499_s8 }
  0x34   : > { %s181_s28 = sshll.u32 %s173_s19, 4  ;;  %p82_p3 = scmp.eq.s32.totalorder %s79_s18, 0  ;;  %s939_s28 = int_to_ptr.vmem [resolvable:$true] %s181_s28 }
  0x35   : > { %s948_s27 = scalar_lea.sflag [#allocation3], %s169_s4  ;;  %s678_s6 = scalar_lea.hbm %s935_s30, 128 }
  0x36   : > { %s944_s26 = scalar_select %p82_p3, %s786_s14, %s84_s20  }
  0x37   : > { %p679_p7 = scmp.ne.s32.totalorder %s935_s30, %s678_s6  ;;  %p680_p8 = pneg %p897_p4 }
  0x38   : > { %s683_s9 = scalar_lea.hbm %s1121_s2, 256  ;;  %p684_p2 = scmp.lt.u32.totalorder %s935_s30, %s1121_s2 }
  0x39   : > { %p681_p9 = pnand %p680_p8, %p679_p7  ;;  %p685_p6 = scmp.lt.u32.totalorder %s683_s9, %s678_s6 }
  0x3a   : > { %p687_p0 = scmp.lt.u32.totalorder %s678_s6, %s935_s30 }
  0x3b   : > { %p682_p12 = pneg %p681_p9  ;;  %p686_p1 = por %p685_p6, %p684_p2 }
  0x3d   : > { %p688_p5 = por %p687_p0, %p686_p1 }
  0x3f   : > { %p689_p10 = pnand %p688_p5, %p682_p12 }
  0x41   : > { %692 = shalt.err (!%p689_p10)
}
  0x42   : > { %s693_s20 = scalar_lea.vmem %s939_s28, 128  ;;  %s802_s4 = smov [#allocation8]  }
  0x43   : > { %p694_p11 = scmp.ne.s32.totalorder %s939_s28, %s693_s20  ;;  %s698_s18 = sshll.u32 %s802_s4, 4  ;;  %s699_s18 = int_to_ptr.vmem [resolvable:$false] %s698_s18 }
  0x44   : > { %s700_s19 = scalar_lea.vmem %s699_s18, 256  ;;  %p701_p9 = scmp.lt.s32.totalorder %s939_s28, %s699_s18 }
  0x45   : > { %p696_p3 = pnand %p694_p11, %p680_p8  ;;  %p702_p2 = scmp.lt.s32.totalorder %s700_s19, %s693_s20 }
  0x47   : > { %p697_p7 = pneg %p696_p3  ;;  %p703_p6 = por %p702_p2, %p701_p9 }
  0x49   : > { %p704_p1 = pnand %p703_p6, %p697_p7 }
  0x4b   : > { %707 = shalt.err (!%p704_p1)
}
  0x4c   : > { %s803_s6 = smov 32   ;;  %s804_s7 = smov 2  }
  0x4d   : > { %569 = dma.hbm_to_vmem [thread:$0]  (!%p897_p4), %s935_s30, 128, %s939_s28, %s948_s27, %s803_s6, %s803_s6, %s804_s7  }
  0x4e   : > { %193 = sbr.rel (%p887_p13) target bundleno = 167 (0xa7), region = 32  ;;  %p1134_p8 = scmp.ne.s32.totalorder (!%p887_p13), %s1127_s21, 0 }
  0x55   : > { %761 = dma.done.wait (%p1134_p8), [#allocation5], 64  }
  0x56   : > { %763 = vsyncadd (%p1134_p8), [#allocation5], 4294967232 }
  0x57   : > { %765 = dma.done.wait (%p1134_p8), [#allocation6], 16  }
  0x58   : > { %767 = vsyncadd (%p1134_p8), [#allocation6], 4294967280  ;;  %s987_s8 = sand.u32 1, %s782_s13   ;;  %p1135_p13 = scmp.ne.s32.totalorder %s1128_s22, 0 }
  0x59   : > { %s505_s25 = sshll.u32 %s987_s8, 3  ;;  %s204_s29 = scalar_lea.sflag [#allocation3], %s987_s8 }
  0x5a   : > { %s993_s30 = scalar_lea.vmem [#allocation8], %s505_s25 }
  0x5b   : > { %769 = dma.done.wait (%p1135_p13), %s204_s29, 128  }
  0x5c   : > { %771 = vsyncadd (%p1135_p13), %s204_s29, 4294967168 }
  0x5d   : > { %212 = sfence }
  0x5e   : > { %s231_s21 = sld [smem:[#allocation2]]  ;;  %s507_s28 = sld [smem:[#allocation2 + $0x1]]  ;;  %v1000_v0 = vld [vmem:[%s993_s30] sm:$0x3]  ;;  %v508_v1 = vld [vmem:[%s993_s30 + $0x2] sm:$0x3] }
  0x5f   : > { %s509_s27 = sld [smem:[#allocation2 + $0x2]]  ;;  %s511_s9 = sld [smem:[#allocation2 + $0x3]]  ;;  %v510_v2 = vld [vmem:[%s993_s30 + $0x4] sm:$0x3]  ;;  %v512_v7 = vld [vmem:[%s993_s30 + $0x6] sm:$0x3] }
  0x60   : > { %s1003_s10 = sld [smem:[#allocation7]]  ;;  %s514_s22 = sld [smem:[#allocation2 + $0x81]]  ;;  %v268_v11 = vld [vmem:[%s993_s30] sm:$0x3]  ;;  %v1014_v12 = vld [vmem:[%s993_s30 + $0x2] sm:$0x3] }
  0x61   : > { %s513_s11 = sld [smem:[#allocation2 + $0x80]]  ;;  %s516_s20 = sld [smem:[#allocation2 + $0x82]]  ;;  %v517_v13 = vld [vmem:[%s993_s30 + $0x4] sm:$0x3]  ;;  %v519_v17 = vld [vmem:[%s993_s30 + $0x6] sm:$0x3] }
  0x62   : > { %s1006_s4 = sld [smem:[#allocation2 + $0x83]]  ;;  %s1010_s18 = sld [smem:[#allocation2 + $0x100]]  ;;  %v302_v21 = vld [vmem:[%s993_s30] sm:$0x3]  ;;  %v524_v26 = vld [vmem:[%s993_s30 + $0x2] sm:$0x3] }
  0x63   : > { %s1016_s19 = sld [smem:[#allocation2 + $0x101]]  ;;  %s1021_s7 = sld [smem:[#allocation2 + $0x102]]  ;;  %v526_v30 = vld [vmem:[%s993_s30 + $0x4] sm:$0x3]  ;;  %v528_v35 = vld [vmem:[%s993_s30 + $0x6] sm:$0x3] }
  0x64   : > { %v233_v3 = vstv %s231_s21  ;;  %v238_v5 = vstv %s507_s28  ;;  %s1019_s6 = sld [smem:[#allocation7 + $0x1]]  ;;  %s1024_s29 = sld [smem:[#allocation2 + $0x103]]  ;;  %v336_v42 = vld [vmem:[%s993_s30] sm:$0x3]  ;;  %v533_v43 = vld [vmem:[%s993_s30 + $0x2] sm:$0x3] }
  0x65   : > { %v234_v4 = vmul.f32 %v233_v3, %v1000_v0  ;;  %v244_v6 = vstv %s509_s27  ;;  %v239_v8 = vmul.f32 %v508_v1, %v238_v5  ;;  %v250_v10 = vstv %s511_s9  ;;  %s1027_s21 = sld [smem:[#allocation7 + $0x2]]  ;;  %s1029_s28 = sld [smem:[#allocation2 + $0x180]]  ;;  %v535_v48 = vld [vmem:[%s993_s30 + $0x4] sm:$0x3]  ;;  %v537_v53 = vld [vmem:[%s993_s30 + $0x6] sm:$0x3] }
  0x66   : > { %v245_v9 = vmul.f32 %v510_v2, %v244_v6  ;;  %v251_v15 = vmul.f32 %v512_v7, %v250_v10  ;;  %v273_v19 = vstv %s514_s22  ;;  %s1034_s27 = sld [smem:[#allocation2 + $0x181]]  ;;  %v254_v27 = vstv %s1003_s10  ;;  %s1039_s9 = sld [smem:[#allocation2 + $0x182]] }
  0x67   : > { %v240_v14 = vadd.f32 %v239_v8, %v234_v4  ;;  %v269_v16 = vstv %s513_s11  ;;  %v278_v20 = vstv %s516_s20  ;;  %v274_v23 = vmul.f32 %v1014_v12, %v273_v19  ;;  %s1043_s11 = sld [smem:[#allocation2 + $0x183]]  ;;  %s230_s30 = scalar_lea.vmem [#allocation9], %s505_s25 }
  0x68   : > { %v270_v18 = vmul.f32 %v269_v16, %v268_v11  ;;  %v279_v24 = vmul.f32 %v517_v13, %v278_v20  ;;  %v283_v25 = vstv %s1006_s4  ;;  %v303_v29 = vstv %s1010_s18  ;;  %s1049_s10 = sld [smem:[#allocation7 + $0x3]]  ;;  %s384_s22 = sshll.u32 %s230_s30, 4  ;;  %s1065_s22 = int_to_ptr.vmem [resolvable:$true] %s384_s22 }
  0x69   : > { %v246_v22 = vadd.f32 %v245_v9, %v240_v14  ;;  %v284_v28 = vmul.f32 %v519_v17, %v283_v25  ;;  %v304_v33 = vmul.f32 %v303_v29, %v302_v21  ;;  %v307_v34 = vstv %s1016_s19  ;;  %s546_s20 = sshll.u32 %s790_s15, 7  ;;  %s370_s19 = scalar_lea.sflag [#allocation4], %s987_s8 }
  0x6a   : > { %v275_v32 = vadd.f32 %v274_v23, %v270_v18  ;;  %v308_v36 = vmul.f32 %v524_v26, %v307_v34  ;;  %v312_v37 = vstv %s1021_s7  ;;  %v317_v41 = vstv %s1024_s29  ;;  %s1070_s25 = scalar_lea.hbm %s1122_s3, %s546_s20  ;;  %p1136_p12 = scmp.ne.s32.totalorder %s1129_s23, 0 }
  0x6b   : > { %v252_v31 = vadd.f32 %v251_v15, %v246_v22  ;;  %v313_v40 = vmul.f32 %v526_v30, %v312_v37  ;;  %v287_v44 = vstv %s1019_s6  ;;  %v318_v46 = vmul.f32 %v528_v35, %v317_v41  ;;  %s708_s6 = scalar_lea.vmem %s1065_s22, 128  ;;  %s805_s15 = smov [#allocation9]  }
  0x6c   : > { %v280_v39 = vadd.f32 %v279_v24, %v275_v32  ;;  %v309_v45 = vadd.f32 %v308_v36, %v304_v33  ;;  %v321_v47 = vstv %s1027_s21  ;;  %v337_v51 = vstv %s1029_s28  ;;  %p709_p4 = scmp.ne.s32.totalorder %s1065_s22, %s708_s6  ;;  %s712_s7 = sshll.u32 %s805_s15, 4  ;;  %s713_s7 = int_to_ptr.vmem [resolvable:$false] %s712_s7 }
  0x6d   : > { %v255_v38 = vadd.f32 %v254_v27, %v252_v31  ;;  %v341_v52 = vstv %s1034_s27  ;;  %v338_v55 = vmul.f32 %v337_v51, %v336_v42  ;;  %v346_v57 = vstv %s1039_s9  ;;  %s714_s29 = scalar_lea.vmem %s713_s7, 256  ;;  %p715_p10 = scmp.lt.s32.totalorder %s1065_s22, %s713_s7 }
  0x6e   : > { %v285_v50 = vadd.f32 %v284_v28, %v280_v39  ;;  %v314_v54 = vadd.f32 %v313_v40, %v309_v45  ;;  %v342_v56 = vmul.f32 %v533_v43, %v341_v52  ;;  %v347_v60 = vmul.f32 %v535_v48, %v346_v57  ;;  %p710_p0 = pnand %p709_p4, %p1136_p12  ;;  %p716_p11 = scmp.lt.s32.totalorder %s714_s29, %s708_s6 }
  0x6f   : > { %v258_v49 = vsub.f32 0.0, %v255_v38  ;;  %v351_v61 = vstv %s1043_s11  ;;  %v256_v62 = vmax.f32 %v1000_v0, 0.001  ;;  %v355_v7 = vstv %s1049_s10 }
  0x70   : > { %v288_v59 = vadd.f32 %v287_v44, %v285_v50  ;;  %v319_v63 = vadd.f32 %v318_v46, %v314_v54  ;;  %v343_v1 = vadd.f32 %v342_v56, %v338_v55  ;;  %v352_v2 = vmul.f32 %v537_v53, %v351_v61  ;;  %p711_p5 = pneg %p710_p0  ;;  %p717_p3 = por %p716_p11, %p715_p10 }
  0x71   : > { %v259_v58 = vmul.f32 1.442695, %v258_v49  ;;  %v257_v8 = vmin.f32 %v256_v62, 0.999  ;;  %v289_v9 = vmax.f32 %v1014_v12, 0.001 }
  0x72   : > { %v291_v3 = vsub.f32 0.0, %v288_v59  ;;  %v322_v4 = vadd.f32 %v321_v47, %v319_v63  ;;  %v348_v5 = vadd.f32 %v347_v60, %v343_v1  ;;  %v323_v15 = vmax.f32 %v526_v30, 0.001  ;;  %p718_p7 = pnand %p717_p3, %p711_p5 }
  0x73   : > { %634 = vpow2.f32 %v259_v58  ;;  %v261_v16 = vsub.f32 1.0, %v257_v8  ;;  %v290_v0 = vmin.f32 %v289_v9, 0.999  ;;  %v357_v21 = vmax.f32 %v537_v53, 0.001 }
  0x74   : > { %v292_v6 = vmul.f32 1.442695, %v291_v3  ;;  %v325_v10 = vsub.f32 0.0, %v322_v4  ;;  %v353_v11 = vadd.f32 %v352_v2, %v348_v5  ;;  %v324_v20 = vmin.f32 %v323_v15, 0.999 }
  0x75   : > { %v294_v23 = vsub.f32 1.0, %v290_v0  ;;  %v358_v26 = vmin.f32 %v357_v21, 0.999 }
  0x76   : > { %636 = vpow2.f32 %v292_v6  ;;  %v326_v13 = vmul.f32 1.442695, %v325_v10  ;;  %v356_v14 = vadd.f32 %v355_v7, %v353_v11  ;;  %v328_v12 = vsub.f32 1.0, %v324_v20 }
  0x77   : > { %v362_v31 = vsub.f32 1.0, %v358_v26 }
  0x78   : > { %638 = vpow2.f32 %v326_v13  ;;  %v359_v17 = vsub.f32 0.0, %v356_v14 }
  0x7a   : > { %v360_v18 = vmul.f32 1.442695, %v359_v17 }
  0x7c   : > { %640 = vpow2.f32 %v360_v18 }
  0x7d   : > { %v635_v19 = vpop.eup %634 }
  0x7e   : > { %v262_v22 = vmul.f32 %v635_v19, %v261_v16 }
  0x80   : > { %v263_v24 = vadd.f32 %v262_v22, %v257_v8  ;;  %v637_v25 = vpop.eup %636 }
  0x81   : > { %v295_v27 = vmul.f32 %v637_v25, %v294_v23 }
  0x82   : > { %642 = vrcp.f32 %v263_v24  ;;  %v639_v28 = vpop.eup %638 }
  0x83   : > { %v296_v29 = vadd.f32 %v295_v27, %v290_v0  ;;  %v329_v30 = vmul.f32 %v639_v28, %v328_v12 }
  0x85   : > { %644 = vrcp.f32 %v296_v29  ;;  %v330_v32 = vadd.f32 %v329_v30, %v324_v20 }
  0x86   : > { %v641_v33 = vpop.eup %640 }
  0x87   : > { %646 = vrcp.f32 %v330_v32  ;;  %v363_v34 = vmul.f32 %v641_v33, %v362_v31 }
  0x89   : > { %v364_v35 = vadd.f32 %v363_v34, %v358_v26 }
  0x8b   : > { %648 = vrcp.f32 %v364_v35 }
  0x8c   : > { %v643_v36 = vpop.eup %642 }
  0x8d   : > { %v265_v37 = vmul.f32 %v643_v36, %v257_v8 }
  0x8f   : > { %266 = vst [vmem:[%s230_s30] sm:$0x3] %v265_v37  ;;  %v645_v38 = vpop.eup %644 }
  0x90   : > { %v298_v39 = vmul.f32 %v645_v38, %v290_v0 }
  0x91   : > { %v647_v40 = vpop.eup %646 }
  0x92   : > { %521 = vst [vmem:[%s230_s30 + $0x2] sm:$0x3] %v298_v39  ;;  %v332_v41 = vmul.f32 %v647_v40, %v324_v20 }
  0x94   : > { %530 = vst [vmem:[%s230_s30 + $0x4] sm:$0x3] %v332_v41 }
  0x95   : > { %v649_v42 = vpop.eup %648 }
  0x96   : > { %v366_v43 = vmul.f32 %v649_v42, %v358_v26 }
  0x98   : > { %539 = vst [vmem:[%s230_s30 + $0x6] sm:$0x3] %v366_v43 }
  0x99   : > { %721 = shalt.err (!%p718_p7)
}
  0x9a   : > { %s722_s21 = scalar_lea.hbm %s1070_s25, 128  ;;  %s726_s9 = scalar_lea.hbm %s1122_s3, 256 }
  0x9b   : > { %p723_p9 = scmp.ne.s32.totalorder %s1070_s25, %s722_s21  ;;  %p727_p1 = scmp.lt.u32.totalorder %s1070_s25, %s1122_s3 }
  0x9c   : > { %p728_p8 = scmp.lt.u32.totalorder %s726_s9, %s722_s21  ;;  %p730_p4 = scmp.lt.u32.totalorder %s722_s21, %s1070_s25 }
  0x9d   : > { %p724_p2 = pnand %p723_p9, %p1136_p12 }
  0x9e   : > { %p729_p13 = por %p728_p8, %p727_p1 }
  0x9f   : > { %p725_p6 = pneg %p724_p2 }
  0xa0   : > { %p731_p0 = por %p730_p4, %p729_p13 }
  0xa2   : > { %p732_p5 = pnand %p731_p0, %p725_p6 }
  0xa4   : > { %735 = shalt.err (!%p732_p5)
}
  0xa5   : > { %s806_s30 = smov 32   ;;  %s807_s20 = smov 2  }
  0xa6   : > { %557 = dma.vmem_to_hbm [thread:$0]  (%p1136_p12), %s1065_s22, 128, %s1070_s25, %s370_s19, %s806_s30, %s806_s30, %s807_s20  }
  0xa7 PF: > { %s399_s4 = sand.u32 1, %s778_s12   ;;  %p1137_p10 = scmp.ne.s32.totalorder %s1130_s24, 0 }
  0xa8   : > { %p1138_p11 = scmp.ge.s32.totalorder %s798_s17, 2  ;;  %s400_s18 = scalar_lea.sflag [#allocation4], %s399_s4 }
  0xaa   : > { %p571_p3 = pnand %p1138_p11, %p1137_p10 }
  0xac   : > { %773 = dma.done.wait (!%p571_p3), %s400_s18, 128  }
  0xad   : > { %775 = vsyncadd (!%p571_p3), %s400_s18, 4294967168  ;;  %s21_s17 = sadd.s32 1, %s798_s17   ;;  %s1139_s12 = smov %s782_s13 }
  0xae   : > { %p18_p7 = scmp.ge.s32.totalorder %s21_s17, 4   ;;  %s1140_s13 = smov %s786_s14 }
  0xaf   : > { %s1141_s14 = smov %s944_s26  ;;  %s1142_s15 = smov %s794_s16 }
  0xb0   : > { %s1143_s16 = smov %s1145_s5  ;;  %20 = sbr.rel (!%p18_p7) target bundleno = 8 (0x8), region = 93 }
  0xb7   :  { %405 = vsyncpa [#allocation3], 1 }
  0xb8   :  { %407 = vsyncpa [#allocation3 + $0x1], 1 }
  0xb9   :  { %408 = vsyncpa [#allocation4], 1 }
  0xba   :  { %410 = vsyncpa [#allocation4 + $0x1], 1 }
  0xbb   :  { %411 = vsyncpa [#allocation5], 1 }
  0xbc   :  { %413 = vsyncpa [#allocation5 + $0x1], 1 }
  0xbd   :  { %414 = vsyncpa [#allocation6], 1 }
  0xbe   :  { %416 = vsyncpa [#allocation6 + $0x1], 1 }

</bundles_post_ra>
